<compile_context>
chip_gen: v6e
topology: v6e:2x2x1
jax: 0.10.0
libtpu: 0.0.40
codegen_flags: <defaults>
</compile_context>

<pallas_src>
import functools
import math

import jax
import jax.numpy as jnp
from jax.experimental import pallas as pl
from jax.experimental.pallas import tpu as pltpu

PATCH = 16
NEG_SLOPE = 0.01   # torch.nn.LeakyReLU default negative_slope
H1P = 512          # logistic-regression hidden 500 padded to lane multiple
H2P = 128          # logistic-regression hidden 100 padded to lane multiple


def _leaky_relu(x):
    return jnp.where(x >= 0, x, NEG_SLOPE * x)


def _round_up(n, m):
    return -(-n // m) * m


def vos_head_kernel(pooled_ref, wp_ref, bp_ref,
                    wc_ref, bc_ref, we_ref,
                    w1_ref, b1_ref, w2_ref, b2_ref, w3d_ref, b3d_ref,
                    out_ref):
    # ---- stand-in backbone tail: patch-embed matmul on the pre-pooled patches ----
    # mean_n(X_n @ W + b) == (mean_n X_n) @ W + b ; the mean is computed in the wrapper.
    z = jnp.dot(pooled_ref[...], wp_ref[...],
                preferred_element_type=jnp.float32) + bp_ref[...]             # (TB, F)

    # _project(): spherical=False -> identity

    # ---- classifier ----
    logit = jnp.dot(z, wc_ref[...], preferred_element_type=jnp.float32) + bc_ref[...]  # (TB, C)

    # ---- VOS energy score: -num_stable_logsumexp(logit, dim=1) ----
    # (weight_energy.weight applied as-is, matching the reference; uniform(0,1) init keeps it >= 0)
    m = jnp.max(logit, axis=1, keepdims=True)                                 # (TB, 1)
    wexp = we_ref[...] * jnp.exp(logit - m)                                   # (TB, C)
    energy = -(m + jnp.log(jnp.sum(wexp, axis=1, keepdims=True)))             # (TB, 1)

    # ---- logistic regression head (hidden dims zero-padded to 512 / 128) ----
    h1 = _leaky_relu(energy * w1_ref[...] + b1_ref[...])                      # (TB, 512)
    h2 = _leaky_relu(jnp.dot(h1, w2_ref[...],
                             preferred_element_type=jnp.float32) + b2_ref[...])  # (TB, 128)

    # ---- softmax(lg, 1)[:, 0] == sigmoid((W3[:,0]-W3[:,1])·h2 + (b3[0]-b3[1])) ----
    d = jnp.sum(h2 * w3d_ref[...], axis=1, keepdims=True) + b3d_ref[...]      # (TB, 1)
    pos = 1.0 / (1.0 + jnp.exp(-jnp.abs(d)))                                  # stable sigmoid
    out_ref[...] = jnp.where(d >= 0, pos, 1.0 - pos)


@functools.partial(jax.jit, static_argnames=("tb",))
def vos_forward(x, params, *, tb=256):
    """x: (B, C, H, W) float32, NCHW. Returns (B,) anomaly score (softmax class-0 prob)."""
    B, C, H, W = x.shape
    ph, pw = H // PATCH, W // PATCH
    P = C * PATCH * PATCH

    F_dim = params["Wp"].shape[1]
    n_class = params["WcT"].shape[1]

    # ---- backbone glue, hoisted out of the kernel ----
    # conv16x16-stride16 patch embed == per-patch flatten + matmul; mean over patches
    # commutes with the linear embed, so pool BEFORE the kernel (N x less HBM traffic).
    pooled = x.reshape(B, C, ph, PATCH, pw, PATCH).mean(axis=(2, 4)).reshape(B, P)
    pooled = pooled.astype(jnp.bfloat16)

    # ---- batch tiling / padding ----
    TB = min(tb, _round_up(B, 8))
    b_pad = _round_up(B, TB)
    if b_pad != B:
        pooled = jnp.pad(pooled, ((0, b_pad - B), (0, 0)))
    grid = (b_pad // TB,)

    # ---- weight prep: bf16 patch-embed weight, lane-padded LR head, folded final layer ----
    wp = params["Wp"].astype(jnp.bfloat16)                                   # (P, F) bf16
    w1 = jnp.pad(params["W1"], ((0, 0), (0, H1P - 500)))                     # (1, 512)
    b1 = jnp.pad(params["b1"], ((0, 0), (0, H1P - 500)))                     # (1, 512)
    w2 = jnp.pad(params["W2T"], ((0, H1P - 500), (0, H2P - 100)))            # (512, 128)
    b2 = jnp.pad(params["b2"], ((0, 0), (0, H2P - 100)))                     # (1, 128)
    w3d = jnp.pad((params["W3T"][:, 0] - params["W3T"][:, 1])[None, :],
                  ((0, 0), (0, H2P - 100)))                                  # (1, 128)
    b3d = params["b3"][:, 0:1] - params["b3"][:, 1:2]                        # (1, 1)

    args = (pooled, wp, params["bp"],
            params["WcT"], params["bc"], params["we"],
            w1, b1, w2, b2, w3d, b3d)

    const = lambda i: (0, 0)
    in_specs = [
        pl.BlockSpec((TB, P), lambda i: (i, 0)),        # pooled activations (tiled over batch)
        pl.BlockSpec((P, F_dim), const),                # Wp          (VMEM-resident)
        pl.BlockSpec((1, F_dim), const),                # bp
        pl.BlockSpec((F_dim, n_class), const),          # WcT
        pl.BlockSpec((1, n_class), const),              # bc
        pl.BlockSpec((1, n_class), const),              # weight_energy
        pl.BlockSpec((1, H1P), const),                  # W1 (row)
        pl.BlockSpec((1, H1P), const),                  # b1
        pl.BlockSpec((H1P, H2P), const),                # W2T
        pl.BlockSpec((1, H2P), const),                  # b2
        pl.BlockSpec((1, H2P), const),                  # W3 column-difference
        pl.BlockSpec((1, 1), const),                    # b3 difference
    ]
    out_specs = pl.BlockSpec((TB, 1), lambda i: (i, 0))

    flops = 2 * b_pad * (P * F_dim + F_dim * n_class + H1P + H1P * H2P + H2P)
    bytes_accessed = (pooled.size * 2 + wp.size * 2
                      + params["bp"].size * 4 + params["WcT"].size * 4
                      + params["bc"].size * 4 + params["we"].size * 4
                      + (w1.size + b1.size + w2.size + b2.size + w3d.size + b3d.size) * 4
                      + b_pad * 4)
    cost = pl.CostEstimate(flops=int(flops),
                           transcendentals=int(b_pad * (n_class + 2)),
                           bytes_accessed=int(bytes_accessed))

    out = pl.pallas_call(
        vos_head_kernel,
        out_shape=jax.ShapeDtypeStruct((b_pad, 1), jnp.float32),
        grid=grid,
        in_specs=in_specs,
        out_specs=out_specs,
        compiler_params=pltpu.CompilerParams(dimension_semantics=("parallel",)),
        cost_estimate=cost,
    )(*args)
    return out[:B, 0]


def init_params(key, P, F, n_class):
    """Deterministic synthetic parameters (PyTorch-Linear-style uniform ranges)."""
    ks = jax.random.split(key, 11)

    def lin(kw, kb, fan_in, shape_w, shape_b):
        bound = 1.0 / math.sqrt(fan_in)
        w = jax.random.uniform(kw, shape_w, jnp.float32, -bound, bound)
        b = jax.random.uniform(kb, shape_b, jnp.float32, -bound, bound)
        return w, b

    Wp, bp = lin(ks[0], ks[1], P, (P, F), (1, F))                  # patch-embed (stand-in backbone)
    WcT, bc = lin(ks[2], ks[3], F, (F, n_class), (1, n_class))     # classifier (transposed)
    we = jax.random.uniform(ks[4], (1, n_class), jnp.float32, 0.0, 1.0)  # weight_energy: uniform_ init
    W1, b1 = lin(ks[5], ks[6], 1, (1, 500), (1, 500))              # Linear(1, 500) weight kept as row
    W2T, b2 = lin(ks[7], ks[8], 500, (500, 100), (1, 100))         # Linear(500, 100) transposed
    W3T, b3 = lin(ks[9], ks[10], 100, (100, 2), (1, 2))            # Linear(100, 2) transposed
    return dict(Wp=Wp, bp=bp, WcT=WcT, bc=bc, we=we,
                W1=W1, b1=b1, W2T=W2T, b2=b2, W3T=W3T, b3=b3)


if __name__ == "__main__":
    key = jax.random.PRNGKey(0)
    kx, kp = jax.random.split(key)

    B, C, H, W = 2, 3, 32, 32         # small ViT-like input (2 x 2 patches of 16)
    F, n_class = 64, 10               # synthetic feature dim / class count
    P = C * PATCH * PATCH

    x = jax.random.normal(kx, (B, C, H, W), jnp.float32)
    params = init_params(kp, P, F, n_class)

    out = vos_forward(x, params)
    out = jax.block_until_ready(out)
    assert out.shape == (B,)
    assert bool(jnp.all(jnp.isfinite(out)))
    assert bool(jnp.all((out >= 0.0) & (out <= 1.0)))
    print("KERNEL_OK")
</pallas_src>

<mosaic_0001>
module attributes {stable_mosaic.version = 11 : i64} {
  func.func @vos_head_kernel(%arg0: i32, %arg1: memref<8x768xbf16, #tpu.memory_space<vmem>>, %arg2: memref<768x64xbf16, #tpu.memory_space<vmem>>, %arg3: memref<1x64xf32, #tpu.memory_space<vmem>>, %arg4: memref<64x10xf32, #tpu.memory_space<vmem>>, %arg5: memref<1x10xf32, #tpu.memory_space<vmem>>, %arg6: memref<1x10xf32, #tpu.memory_space<vmem>>, %arg7: memref<1x512xf32, #tpu.memory_space<vmem>>, %arg8: memref<1x512xf32, #tpu.memory_space<vmem>>, %arg9: memref<512x128xf32, #tpu.memory_space<vmem>>, %arg10: memref<1x128xf32, #tpu.memory_space<vmem>>, %arg11: memref<1x128xf32, #tpu.memory_space<vmem>>, %arg12: memref<1x1xf32, #tpu.memory_space<vmem>>, %arg13: memref<8x1xf32, #tpu.memory_space<vmem>>) attributes {dimension_semantics = [#tpu.dimension_semantics<parallel>], iteration_bounds = array<i64: 1>, scalar_prefetch = 0 : i64, scratch_operands = 0 : i64, tpu.core_type = #tpu.core_type<tc>, window_params = [{transform_indices = @transform_0, window_bounds = array<i64: 8, 768>}, {pipeline_mode = #tpu.pipeline_mode<synchronous>, transform_indices = @transform_1, window_bounds = array<i64: 768, 64>}, {pipeline_mode = #tpu.pipeline_mode<synchronous>, transform_indices = @transform_2, window_bounds = array<i64: 1, 64>}, {pipeline_mode = #tpu.pipeline_mode<synchronous>, transform_indices = @transform_3, window_bounds = array<i64: 64, 10>}, {pipeline_mode = #tpu.pipeline_mode<synchronous>, transform_indices = @transform_4, window_bounds = array<i64: 1, 10>}, {pipeline_mode = #tpu.pipeline_mode<synchronous>, transform_indices = @transform_5, window_bounds = array<i64: 1, 10>}, {pipeline_mode = #tpu.pipeline_mode<synchronous>, transform_indices = @transform_6, window_bounds = array<i64: 1, 512>}, {pipeline_mode = #tpu.pipeline_mode<synchronous>, transform_indices = @transform_7, window_bounds = array<i64: 1, 512>}, {pipeline_mode = #tpu.pipeline_mode<synchronous>, transform_indices = @transform_8, window_bounds = array<i64: 512, 128>}, {pipeline_mode = #tpu.pipeline_mode<synchronous>, transform_indices = @transform_9, window_bounds = array<i64: 1, 128>}, {pipeline_mode = #tpu.pipeline_mode<synchronous>, transform_indices = @transform_10, window_bounds = array<i64: 1, 128>}, {pipeline_mode = #tpu.pipeline_mode<synchronous>, transform_indices = @transform_11, window_bounds = array<i64: 1, 1>}, {transform_indices = @transform_12, window_bounds = array<i64: 8, 1>}]} {
    %c0 = arith.constant 0 : index
    %c0_0 = arith.constant 0 : index
    %0 = vector.load %arg1[%c0, %c0_0] : memref<8x768xbf16, #tpu.memory_space<vmem>>, vector<8x768xbf16>
    %c0_1 = arith.constant 0 : index
    %c0_2 = arith.constant 0 : index
    %1 = vector.load %arg2[%c0_1, %c0_2] : memref<768x64xbf16, #tpu.memory_space<vmem>>, vector<768x64xbf16>
    %cst = arith.constant dense<0.000000e+00> : vector<8x64xf32>
    %2 = tpu.matmul %0, %1, %cst {dimension_numbers = #tpu.dot_dimension_numbers<[1], [0], [0], [1], [0, 0, 1, 1], [], []>} : vector<8x768xbf16>, vector<768x64xbf16>, vector<8x64xf32> -> vector<8x64xf32>
    %c0_3 = arith.constant 0 : index
    %c0_4 = arith.constant 0 : index
    %3 = vector.load %arg3[%c0_3, %c0_4] : memref<1x64xf32, #tpu.memory_space<vmem>>, vector<1x64xf32>
    %4 = vector.broadcast %3 : vector<1x64xf32> to vector<8x64xf32>
    %5 = arith.addf %2, %4 : vector<8x64xf32>
    %c0_5 = arith.constant 0 : index
    %c0_6 = arith.constant 0 : index
    %6 = vector.load %arg4[%c0_5, %c0_6] : memref<64x10xf32, #tpu.memory_space<vmem>>, vector<64x10xf32>
    %cst_7 = arith.constant dense<0.000000e+00> : vector<8x10xf32>
    %7 = tpu.matmul %5, %6, %cst_7 {dimension_numbers = #tpu.dot_dimension_numbers<[1], [0], [0], [1], [0, 0, 1, 1], [], []>} : vector<8x64xf32>, vector<64x10xf32>, vector<8x10xf32> -> vector<8x10xf32>
    %c0_8 = arith.constant 0 : index
    %c0_9 = arith.constant 0 : index
    %8 = vector.load %arg5[%c0_8, %c0_9] : memref<1x10xf32, #tpu.memory_space<vmem>>, vector<1x10xf32>
    %9 = vector.broadcast %8 : vector<1x10xf32> to vector<8x10xf32>
    %10 = arith.addf %7, %9 : vector<8x10xf32>
    %cst_10 = arith.constant dense<0xFF800000> : vector<8xf32>
    %11 = vector.multi_reduction <maximumf>, %10, %cst_10 [1] : vector<8x10xf32> to vector<8xf32>
    %12 = vector.shape_cast %11 : vector<8xf32> to vector<8x1xf32>
    %c0_11 = arith.constant 0 : index
    %c0_12 = arith.constant 0 : index
    %13 = vector.load %arg6[%c0_11, %c0_12] : memref<1x10xf32, #tpu.memory_space<vmem>>, vector<1x10xf32>
    %14 = vector.broadcast %12 : vector<8x1xf32> to vector<8x10xf32>
    %15 = arith.subf %10, %14 : vector<8x10xf32>
    %16 = math.exp %15 : vector<8x10xf32>
    %17 = vector.broadcast %13 : vector<1x10xf32> to vector<8x10xf32>
    %18 = arith.mulf %17, %16 : vector<8x10xf32>
    %cst_13 = arith.constant dense<0.000000e+00> : vector<8xf32>
    %19 = vector.multi_reduction <add>, %18, %cst_13 [1] : vector<8x10xf32> to vector<8xf32>
    %20 = vector.shape_cast %19 : vector<8xf32> to vector<8x1xf32>
    %21 = math.log %20 : vector<8x1xf32>
    %22 = arith.addf %12, %21 : vector<8x1xf32>
    %cst_14 = arith.constant 0.000000e+00 : f32
    %23 = vector.broadcast %cst_14 : f32 to vector<8x1xf32>
    %24 = arith.subf %23, %22 : vector<8x1xf32>
    %c0_15 = arith.constant 0 : index
    %c0_16 = arith.constant 0 : index
    %25 = vector.load %arg7[%c0_15, %c0_16] : memref<1x512xf32, #tpu.memory_space<vmem>>, vector<1x512xf32>
    %26 = vector.broadcast %24 : vector<8x1xf32> to vector<8x512xf32>
    %27 = vector.broadcast %25 : vector<1x512xf32> to vector<8x512xf32>
    %28 = arith.mulf %26, %27 : vector<8x512xf32>
    %c0_17 = arith.constant 0 : index
    %c0_18 = arith.constant 0 : index
    %29 = vector.load %arg8[%c0_17, %c0_18] : memref<1x512xf32, #tpu.memory_space<vmem>>, vector<1x512xf32>
    %30 = vector.broadcast %29 : vector<1x512xf32> to vector<8x512xf32>
    %31 = arith.addf %28, %30 : vector<8x512xf32>
    %cst_19 = arith.constant 0.000000e+00 : f32
    %32 = vector.broadcast %cst_19 : f32 to vector<8x512xf32>
    %33 = arith.cmpf oge, %31, %32 : vector<8x512xf32>
    %cst_20 = arith.constant 0.00999999977 : f32
    %34 = vector.broadcast %cst_20 : f32 to vector<8x512xf32>
    %35 = arith.mulf %34, %31 : vector<8x512xf32>
    %36 = arith.select %33, %31, %35 : vector<8x512xi1>, vector<8x512xf32>
    %c0_21 = arith.constant 0 : index
    %c0_22 = arith.constant 0 : index
    %37 = vector.load %arg9[%c0_21, %c0_22] : memref<512x128xf32, #tpu.memory_space<vmem>>, vector<512x128xf32>
    %cst_23 = arith.constant dense<0.000000e+00> : vector<8x128xf32>
    %38 = tpu.matmul %36, %37, %cst_23 {dimension_numbers = #tpu.dot_dimension_numbers<[1], [0], [0], [1], [0, 0, 1, 1], [], []>} : vector<8x512xf32>, vector<512x128xf32>, vector<8x128xf32> -> vector<8x128xf32>
    %c0_24 = arith.constant 0 : index
    %c0_25 = arith.constant 0 : index
    %39 = vector.load %arg10[%c0_24, %c0_25] : memref<1x128xf32, #tpu.memory_space<vmem>>, vector<1x128xf32>
    %40 = vector.broadcast %39 : vector<1x128xf32> to vector<8x128xf32>
    %41 = arith.addf %38, %40 : vector<8x128xf32>
    %cst_26 = arith.constant 0.000000e+00 : f32
    %42 = vector.broadcast %cst_26 : f32 to vector<8x128xf32>
    %43 = arith.cmpf oge, %41, %42 : vector<8x128xf32>
    %cst_27 = arith.constant 0.00999999977 : f32
    %44 = vector.broadcast %cst_27 : f32 to vector<8x128xf32>
    %45 = arith.mulf %44, %41 : vector<8x128xf32>
    %46 = arith.select %43, %41, %45 : vector<8x128xi1>, vector<8x128xf32>
    %c0_28 = arith.constant 0 : index
    %c0_29 = arith.constant 0 : index
    %47 = vector.load %arg11[%c0_28, %c0_29] : memref<1x128xf32, #tpu.memory_space<vmem>>, vector<1x128xf32>
    %48 = vector.broadcast %47 : vector<1x128xf32> to vector<8x128xf32>
    %49 = arith.mulf %46, %48 : vector<8x128xf32>
    %cst_30 = arith.constant dense<0.000000e+00> : vector<8xf32>
    %50 = vector.multi_reduction <add>, %49, %cst_30 [1] : vector<8x128xf32> to vector<8xf32>
    %51 = vector.shape_cast %50 : vector<8xf32> to vector<8x1xf32>
    %c0_31 = arith.constant 0 : index
    %c0_32 = arith.constant 0 : index
    %52 = vector.load %arg12[%c0_31, %c0_32] : memref<1x1xf32, #tpu.memory_space<vmem>>, vector<1x1xf32>
    %53 = vector.broadcast %52 : vector<1x1xf32> to vector<8x1xf32>
    %54 = arith.addf %51, %53 : vector<8x1xf32>
    %55 = math.absf %54 : vector<8x1xf32>
    %cst_33 = arith.constant 0.000000e+00 : f32
    %56 = vector.broadcast %cst_33 : f32 to vector<8x1xf32>
    %57 = arith.subf %56, %55 : vector<8x1xf32>
    %58 = math.exp %57 : vector<8x1xf32>
    %cst_34 = arith.constant 1.000000e+00 : f32
    %59 = vector.broadcast %cst_34 : f32 to vector<8x1xf32>
    %60 = arith.addf %59, %58 : vector<8x1xf32>
    %cst_35 = arith.constant 1.000000e+00 : f32
    %61 = vector.broadcast %cst_35 : f32 to vector<8x1xf32>
    %62 = arith.divf %61, %60 : vector<8x1xf32>
    %cst_36 = arith.constant 0.000000e+00 : f32
    %63 = vector.broadcast %cst_36 : f32 to vector<8x1xf32>
    %64 = arith.cmpf oge, %54, %63 : vector<8x1xf32>
    %cst_37 = arith.constant 1.000000e+00 : f32
    %65 = vector.broadcast %cst_37 : f32 to vector<8x1xf32>
    %66 = arith.subf %65, %62 : vector<8x1xf32>
    %67 = arith.select %64, %62, %66 : vector<8x1xi1>, vector<8x1xf32>
    %c0_38 = arith.constant 0 : index
    %c0_39 = arith.constant 0 : index
    %68 = vector.load %arg13[%c0_38, %c0_39] : memref<8x1xf32, #tpu.memory_space<vmem>>, vector<8x1xf32>
    tpu.vector_store %arg13[%c0_38, %c0_39], %67 {strides = array<i32>} : memref<8x1xf32, #tpu.memory_space<vmem>>, vector<8x1xf32>,
    return
  }
  func.func @transform_0(%arg0: i32) -> (i32, i32) {
    %c0_i32 = arith.constant 0 : i32
    %c0_i32_0 = arith.constant 0 : i32
    return %arg0, %c0_i32 : i32, i32
  }
  func.func @transform_1(%arg0: i32) -> (i32, i32) {
    %c0_i32 = arith.constant 0 : i32
    %c0_i32_0 = arith.constant 0 : i32
    %c0_i32_1 = arith.constant 0 : i32
    return %c0_i32, %c0_i32_0 : i32, i32
  }
  func.func @transform_2(%arg0: i32) -> (i32, i32) {
    %c0_i32 = arith.constant 0 : i32
    %c0_i32_0 = arith.constant 0 : i32
    %c0_i32_1 = arith.constant 0 : i32
    return %c0_i32, %c0_i32_0 : i32, i32
  }
  func.func @transform_3(%arg0: i32) -> (i32, i32) {
    %c0_i32 = arith.constant 0 : i32
    %c0_i32_0 = arith.constant 0 : i32
    %c0_i32_1 = arith.constant 0 : i32
    return %c0_i32, %c0_i32_0 : i32, i32
  }
  func.func @transform_4(%arg0: i32) -> (i32, i32) {
    %c0_i32 = arith.constant 0 : i32
    %c0_i32_0 = arith.constant 0 : i32
    %c0_i32_1 = arith.constant 0 : i32
    return %c0_i32, %c0_i32_0 : i32, i32
  }
  func.func @transform_5(%arg0: i32) -> (i32, i32) {
    %c0_i32 = arith.constant 0 : i32
    %c0_i32_0 = arith.constant 0 : i32
    %c0_i32_1 = arith.constant 0 : i32
    return %c0_i32, %c0_i32_0 : i32, i32
  }
  func.func @transform_6(%arg0: i32) -> (i32, i32) {
    %c0_i32 = arith.constant 0 : i32
    %c0_i32_0 = arith.constant 0 : i32
    %c0_i32_1 = arith.constant 0 : i32
    return %c0_i32, %c0_i32_0 : i32, i32
  }
  func.func @transform_7(%arg0: i32) -> (i32, i32) {
    %c0_i32 = arith.constant 0 : i32
    %c0_i32_0 = arith.constant 0 : i32
    %c0_i32_1 = arith.constant 0 : i32
    return %c0_i32, %c0_i32_0 : i32, i32
  }
  func.func @transform_8(%arg0: i32) -> (i32, i32) {
    %c0_i32 = arith.constant 0 : i32
    %c0_i32_0 = arith.constant 0 : i32
    %c0_i32_1 = arith.constant 0 : i32
    return %c0_i32, %c0_i32_0 : i32, i32
  }
  func.func @transform_9(%arg0: i32) -> (i32, i32) {
    %c0_i32 = arith.constant 0 : i32
    %c0_i32_0 = arith.constant 0 : i32
    %c0_i32_1 = arith.constant 0 : i32
    return %c0_i32, %c0_i32_0 : i32, i32
  }
  func.func @transform_10(%arg0: i32) -> (i32, i32) {
    %c0_i32 = arith.constant 0 : i32
    %c0_i32_0 = arith.constant 0 : i32
    %c0_i32_1 = arith.constant 0 : i32
    return %c0_i32, %c0_i32_0 : i32, i32
  }
  func.func @transform_11(%arg0: i32) -> (i32, i32) {
    %c0_i32 = arith.constant 0 : i32
    %c0_i32_0 = arith.constant 0 : i32
    %c0_i32_1 = arith.constant 0 : i32
    return %c0_i32, %c0_i32_0 : i32, i32
  }
  func.func @transform_12(%arg0: i32) -> (i32, i32) {
    %c0_i32 = arith.constant 0 : i32
    %c0_i32_0 = arith.constant 0 : i32
    return %arg0, %c0_i32 : i32, i32
  }
}

</mosaic_0001>

<bundles_post_ra>
// kernel: vos_forward.1
= control target key start
LH: loop header
LB: loop body
LE: loop exit
PB: predicated region body
PF: predicated region fallthrough
CT: control target
= control target key end

     0   :  { %v1291_v57 = vmov 0.0   ;;  %vm1292_vm0 = vmmov 0   ;;  %vm594_vm1 = vcmask 523264   ;;  %vm668_vm2 = vcmask 80896   ;;  %s1760_s1 = inlined_call_operand.vmem [shape: bf16[768,64], index: 1, kind: input, shape index: {}]   ;;  %s1761_s0 = inlined_call_operand.vmem [shape: bf16[8,768], index: 0, kind: input, shape index: {}]   ;;  %s1762_s3 = inlined_call_operand.vmem [shape: f32[64,10], index: 3, kind: input, shape index: {}]   ;;  %s1763_s2 = inlined_call_operand.vmem [shape: f32[1,64], index: 2, kind: input, shape index: {}]   ;;  %s1764_s4 = inlined_call_operand.vmem [shape: f32[1,10], index: 4, kind: input, shape index: {}]   ;;  %s1765_s8 = inlined_call_operand.vmem [shape: f32[512,128], index: 8, kind: input, shape index: {}]   ;;  %s1766_s5 = inlined_call_operand.vmem [shape: f32[1,10], index: 5, kind: input, shape index: {}]   ;;  %s1767_s6 = inlined_call_operand.vmem [shape: f32[1,512], index: 6, kind: input, shape index: {}]   ;;  %s1768_s7 = inlined_call_operand.vmem [shape: f32[1,512], index: 7, kind: input, shape index: {}]   ;;  %s1769_s11 = inlined_call_operand.<no memory space> [shape: f32[1,1], index: 11, kind: input, shape index: {}]   ;;  %s1770_s9 = inlined_call_operand.vmem [shape: f32[1,128], index: 9, kind: input, shape index: {}]   ;;  %s1771_s10 = inlined_call_operand.vmem [shape: f32[1,128], index: 10, kind: input, shape index: {}]   ;;  %s1772_s12 = inlined_call_operand.vmem [shape: f32[8,1], index: 12, kind: output, shape index: {}]  }
   0x1   :  { %v1229_v0 = vld [vmem:[%s1760_s1 + $0x78] sm:$0xff]   ;;  %v1233_v4 = vld [vmem:[%s1760_s1 + $0x70] sm:$0xff]   ;;  %v1237_v8 = vld [vmem:[%s1760_s1 + $0x68] sm:$0xff]   ;;  %vm996_vm8 = vcmask 7168  }
   0x2   :  { %v1230_v1 = vld [vmem:[%s1760_s1 + $0x38] sm:$0xff]   ;;  %1063 = vmatprep.subr.bf16.mxu0 %v1229_v0  ;;  %v1234_v5 = vld [vmem:[%s1760_s1 + $0x30] sm:$0xff]   ;;  %v1238_v9 = vld [vmem:[%s1760_s1 + $0x28] sm:$0xff]  }
   0x3   :  { %v1231_v2 = vld [vmem:[%s1760_s1 + $0xf8] sm:$0xff]   ;;  %1064 = vmatpush3.bf16.msra.mxu0 %v1230_v1  ;;  %v1235_v6 = vld [vmem:[%s1760_s1 + $0xf0] sm:$0xff]   ;;  %v1239_v10 = vld [vmem:[%s1760_s1 + $0xe8] sm:$0xff]  }
   0x4   :  { %v1232_v3 = vld [vmem:[%s1760_s1 + $0xb8] sm:$0xff]   ;;  %1085 = vmatprep.subr.bf16.mxu1 %v1231_v2  ;;  %1065 = vmatprep.subr.bf16.mxu0 %v1233_v4  ;;  %v1236_v7 = vld [vmem:[%s1760_s1 + $0xb0] sm:$0xff]   ;;  %v1240_v11 = vld [vmem:[%s1760_s1 + $0xa8] sm:$0xff]  }
   0x5   :  { %1086 = vmatpush3.bf16.msra.mxu1 %v1232_v3  ;;  %v1241_v12 = vld [vmem:[%s1760_s1 + $0x60] sm:$0xff]   ;;  %v1245_v16 = vld [vmem:[%s1760_s1 + $0x58] sm:$0xff]   ;;  %v1249_v20 = vld [vmem:[%s1760_s1 + $0x50] sm:$0xff]  }
   0x6   :  { %1087 = vmatprep.subr.bf16.mxu1 %v1235_v6  ;;  %v1242_v13 = vld [vmem:[%s1760_s1 + $0x20] sm:$0xff]   ;;  %v1246_v17 = vld [vmem:[%s1760_s1 + $0x18] sm:$0xff]   ;;  %v1250_v21 = vld [vmem:[%s1760_s1 + $0x10] sm:$0xff]  }
   0x7   :  { %1066 = vmatpush3.bf16.msra.mxu0 %v1234_v5  ;;  %v1243_v14 = vld [vmem:[%s1760_s1 + $0xe0] sm:$0xff]   ;;  %v1247_v18 = vld [vmem:[%s1760_s1 + $0xd8] sm:$0xff]   ;;  %v1251_v22 = vld [vmem:[%s1760_s1 + $0xd0] sm:$0xff]  }
   0x8   :  { %1067 = vmatprep.subr.bf16.mxu0 %v1237_v8  ;;  %v1244_v15 = vld [vmem:[%s1760_s1 + $0xa0] sm:$0xff]   ;;  %v1248_v19 = vld [vmem:[%s1760_s1 + $0x98] sm:$0xff]   ;;  %v1252_v23 = vld [vmem:[%s1760_s1 + $0x90] sm:$0xff]  }
   0x9   :  { %1088 = vmatpush3.bf16.msra.mxu1 %v1236_v7  ;;  %v1253_v24 = vld [vmem:[%s1760_s1 + $0x48] sm:$0xff]   ;;  %v1257_v28 = vld [vmem:[%s1760_s1 + $0x40] sm:$0xff]   ;;  %v1263_v35 = vld [vmem:[%s1760_s1 + $0x178] sm:$0xff]  }
   0xa   :  { %1089 = vmatprep.subr.bf16.mxu1 %v1239_v10  ;;  %v1254_v25 = vld [vmem:[%s1760_s1 + $0x8] sm:$0xff]   ;;  %v1258_v29 = vld [vmem:[%s1760_s1] sm:$0xff]   ;;  %v1266_v39 = vld [vmem:[%s1760_s1 + $0x138] sm:$0xff]  }
   0xb   :  { %1068 = vmatpush3.bf16.msra.mxu0 %v1238_v9  ;;  %v1255_v26 = vld [vmem:[%s1760_s1 + $0xc8] sm:$0xff]   ;;  %v1259_v30 = vld [vmem:[%s1760_s1 + $0xc0] sm:$0xff]   ;;  %v1267_v40 = vld [vmem:[%s1760_s1 + $0x170] sm:$0xff]  }
   0xc   :  { %1069 = vmatprep.subr.bf16.mxu0 %v1241_v12  ;;  %v1256_v27 = vld [vmem:[%s1760_s1 + $0x88] sm:$0xff]   ;;  %v44_v31 = vld [vmem:[%s1761_s0] sm:$0xff]  ;;  %v1268_v41 = vld [vmem:[%s1760_s1 + $0x130] sm:$0xff]  }
   0xd   :  { %1090 = vmatpush3.bf16.msra.mxu1 %v1240_v11  ;;  %v1003_v32 = vcombine.low %v44_v31, %v44_v31  ;;  %v1004_v33 = vcombine.high %v44_v31, %v44_v31  ;;  %v1262_v34 = vld [vmem:[%s1760_s1 + $0x80] sm:$0xff]   ;;  %v45_v36 = vld [vmem:[%s1761_s0 + $0x8] sm:$0xff]  ;;  %v1273_v46 = vld [vmem:[%s1760_s1 + $0x158] sm:$0xff]  }
   0xe   :  { %1091 = vmatprep.subr.bf16.mxu1 %v1243_v14  ;;  %v1005_v37 = vcombine.low %v45_v36, %v45_v36  ;;  %v1006_v38 = vcombine.high %v45_v36, %v45_v36  ;;  %v1269_v42 = vld [vmem:[%s1760_s1 + $0x168] sm:$0xff]   ;;  %v1271_v44 = vld [vmem:[%s1760_s1 + $0x160] sm:$0xff]   ;;  %v1274_v47 = vld [vmem:[%s1760_s1 + $0x118] sm:$0xff]  }
   0xf   :  { %1070 = vmatpush3.bf16.msra.mxu0 %v1242_v13  ;;  %491 = vmatprep.mubr.bf16.mxu0 %v1004_v33  ;;  %v1270_v43 = vld [vmem:[%s1760_s1 + $0x128] sm:$0xff]   ;;  %v1272_v45 = vld [vmem:[%s1760_s1 + $0x120] sm:$0xff]   ;;  %v46_v48 = vld [vmem:[%s1761_s0 + $0x10] sm:$0xff] }
  0x10   :  { %1071 = vmatprep.subr.bf16.mxu0 %v1245_v16  ;;  %531 = vmatprep.mubr.bf16.mxu1 %v1006_v38  ;;  %v1275_v49 = vld [vmem:[%s1760_s1 + $0x150] sm:$0xff]   ;;  %v1008_v50 = vcombine.high %v46_v48, %v46_v48  ;;  %v1277_v52 = vld [vmem:[%s1760_s1 + $0x148] sm:$0xff]   ;;  %v1279_v54 = vld [vmem:[%s1760_s1 + $0x140] sm:$0xff]   ;;  %v1007_v56 = vcombine.low %v46_v48, %v46_v48 }
  0x11   :  { %1092 = vmatpush3.bf16.msra.mxu1 %v1244_v15  ;;  %v1276_v51 = vld [vmem:[%s1760_s1 + $0x110] sm:$0xff]   ;;  %v1278_v53 = vld [vmem:[%s1760_s1 + $0x108] sm:$0xff]   ;;  %v1280_v55 = vld [vmem:[%s1760_s1 + $0x100] sm:$0xff]  }
  0x12   :  { %1093 = vmatprep.subr.bf16.mxu1 %v1247_v18  ;;  %v586_v58 = vld [vmem:[%s1762_s3 + $0x38] sm:$0xff]  ;;  %v585_v59 = vld [vmem:[%s1762_s3 + $0x30] sm:$0xff]  ;;  %v584_v60 = vld [vmem:[%s1762_s3 + $0x28] sm:$0xff] }
  0x13   :  { %1072 = vmatpush3.bf16.msra.mxu0 %v1246_v17  ;;  %v583_v61 = vld [vmem:[%s1762_s3 + $0x20] sm:$0xff]  ;;  %v582_v62 = vld [vmem:[%s1762_s3 + $0x18] sm:$0xff]  ;;  %v581_v63 = vld [vmem:[%s1762_s3 + $0x10] sm:$0xff] }
  0x14   :  { %1073 = vmatprep.subr.bf16.mxu0 %v1249_v20  ;;  %v580_v0 = vld [vmem:[%s1762_s3 + $0x8] sm:$0xff]  ;;  %v579_v1 = vld [vmem:[%s1762_s3] sm:$0xff]  ;;  %v816_v31 = vld [vmem:[%s1765_s8 + $0x1f0] sm:$0xff] }
  0x15   :  { %1094 = vmatpush3.bf16.msra.mxu1 %v1248_v19  ;;  %v1002_v11 = vld [vmem:[%s1763_s2] ss:$0 sm:$0xff]  ;;  %v800_v33 = vld [vmem:[%s1765_s8 + $0x170] sm:$0xff] }
  0x16   :  { %1095 = vmatprep.subr.bf16.mxu1 %v1251_v22  ;;  %v798_v48 = vld [vmem:[%s1765_s8 + $0x160] sm:$0xff] }
  0x17   :  { %1074 = vmatpush3.bf16.msra.mxu0 %v1250_v21  ;;  %v1057_v21 = vld [vmem:[%s1764_s4] ss:$0 sm:$0xff] }
  0x18   :  { %1075 = vmatprep.subr.bf16.mxu0 %v1253_v24 }
  0x19   :  { %1096 = vmatpush3.bf16.msra.mxu1 %v1252_v23 }
  0x1a   :  { %1097 = vmatprep.subr.bf16.mxu1 %v1255_v26  ;;  %v785_v26 = vld [vmem:[%s1765_s8 + $0xf8] sm:$0xff] }
  0x1b   :  { %1076 = vmatpush3.bf16.msra.mxu0 %v1254_v25 }
  0x1c   :  { %1077 = vmatprep.subr.bf16.mxu0 %v1257_v28  ;;  %v769_v28 = vld [vmem:[%s1765_s8 + $0x78] sm:$0xff] }
  0x1d   :  { %1098 = vmatpush3.bf16.msra.mxu1 %v1256_v27  ;;  %v817_v27 = vld [vmem:[%s1765_s8 + $0x1f8] sm:$0xff] }
  0x1e   :  { %1099 = vmatprep.subr.bf16.mxu1 %v1259_v30  ;;  %v784_v30 = vld [vmem:[%s1765_s8 + $0xf0] sm:$0xff] }
  0x1f   :  { %1078 = vmatpush3.bf16.msra.mxu0 %v1258_v29  ;;  %v801_v29 = vld [vmem:[%s1765_s8 + $0x178] sm:$0xff] }
  0x20   :  { %1107 = vmatprep.subr.bf16.mxu0 %v1263_v35 }
  0x21   :  { %1100 = vmatpush3.bf16.msra.mxu1 %v1262_v34 }
  0x22   :  { %492 = vmatmul.mubr.bf16.vlgmr.msra.gmra.mxu0 %v1003_v32  ;;  %1208 = vmatprep.subr.mxu1 %v1291_v57  ;;  %v768_v32 = vld [vmem:[%s1765_s8 + $0x70] sm:$0xff] }
  0x23   :  { %1108 = vmatpush3.bf16.msra.mxu0 %v1266_v39  ;;  %571 = vmatprep.mubr.bf16.mxu0 %v1008_v50  ;;  %v813_v50 = vld [vmem:[%s1765_s8 + $0x1d8] sm:$0xff] }
  0x24   :  { %532 = vmatmul.mubr.bf16.vlgmr.msra.gmra.mxu1 %v1005_v37  ;;  %1109 = vmatprep.subr.bf16.mxu0 %v1267_v40  ;;  %v1059_v37 = vld [vmem:[%s1766_s5] ss:$0 sm:$0xff] }
  0x25   :  { %1209 = vmatpush3.msra.mxu1 %v586_v58  ;;  %1224 = vmatprep.mubr.msk.f32.mxu1 %vm1292_vm0, %v1291_v57  ;;  %v811_v58 = vld [vmem:[%s1765_s8 + $0x1c8] sm:$0xff] }
  0x26   :  { %1210 = vmatprep.subr.mxu1 %v1291_v57 }
  0x27   :  { %1110 = vmatpush3.bf16.msra.mxu0 %v1268_v41  ;;  %1211 = vmatpush3.msra.mxu1 %v585_v59  ;;  %v783_v41 = vld [vmem:[%s1765_s8 + $0xe8] sm:$0xff] }
  0x28   :  { %1111 = vmatprep.subr.bf16.mxu0 %v1269_v42  ;;  %1212 = vmatprep.subr.mxu1 %v1291_v57  ;;  %v815_v42 = vld [vmem:[%s1765_s8 + $0x1e8] sm:$0xff] }
  0x29   :  { %1213 = vmatpush3.msra.mxu1 %v584_v60  ;;  %v763_v59 = vld [vmem:[%s1765_s8 + $0x48] sm:$0xff] }
  0x2a   :  { %1214 = vmatprep.subr.mxu1 %v1291_v57  ;;  %v795_v60 = vld [vmem:[%s1765_s8 + $0x148] sm:$0xff] }
  0x2b   :  { %1112 = vmatpush3.bf16.msra.mxu0 %v1270_v43  ;;  %1215 = vmatpush3.msra.mxu1 %v583_v61  ;;  %v767_v43 = vld [vmem:[%s1765_s8 + $0x68] sm:$0xff]  ;;  %v778_v61 = vld [vmem:[%s1765_s8 + $0xc0] sm:$0xff] }
  0x2c   :  { %1113 = vmatprep.subr.bf16.mxu0 %v1271_v44  ;;  %1216 = vmatprep.subr.mxu1 %v1291_v57  ;;  %v799_v44 = vld [vmem:[%s1765_s8 + $0x168] sm:$0xff] }
  0x2d   :  { %1217 = vmatpush3.msra.mxu1 %v582_v62  ;;  %v810_v62 = vld [vmem:[%s1765_s8 + $0x1c0] sm:$0xff] }
  0x2e   :  { %1218 = vmatprep.subr.mxu1 %v1291_v57 }
  0x2f   :  { %1114 = vmatpush3.bf16.msra.mxu0 %v1272_v45  ;;  %1219 = vmatpush3.msra.mxu1 %v581_v63  ;;  %v782_v45 = vld [vmem:[%s1765_s8 + $0xe0] sm:$0xff] }
  0x30   :  { %1115 = vmatprep.subr.bf16.mxu0 %v1273_v46  ;;  %1220 = vmatprep.subr.mxu1 %v1291_v57  ;;  %v814_v46 = vld [vmem:[%s1765_s8 + $0x1e0] sm:$0xff] }
  0x31   :  { %1221 = vmatpush3.msra.mxu1 %v580_v0  ;;  %v762_v63 = vld [vmem:[%s1765_s8 + $0x40] sm:$0xff] }
  0x32   :  { %1222 = vmatprep.subr.mxu1 %v1291_v57  ;;  %v779_v57 = vld [vmem:[%s1765_s8 + $0xc8] sm:$0xff]  ;;  %v794_v0 = vld [vmem:[%s1765_s8 + $0x140] sm:$0xff] }
  0x33   :  { %1116 = vmatpush3.bf16.msra.mxu0 %v1274_v47  ;;  %1223 = vmatpush3.msra.mxu1 %v579_v1  ;;  %v766_v47 = vld [vmem:[%s1765_s8 + $0x60] sm:$0xff]  ;;  %v777_v1 = vld [vmem:[%s1765_s8 + $0xb8] sm:$0xff] }
  0x34   :  { %1117 = vmatprep.subr.bf16.mxu0 %v1275_v49  ;;  %1138 = vmatprep.subr.mxu1 %v785_v26  ;;  %v781_v49 = vld [vmem:[%s1765_s8 + $0xd8] sm:$0xff]  ;;  %v803_v26 = vld [vmem:[%s1765_s8 + $0x188] sm:$0xff] }
  0x37   :  { %1118 = vmatpush3.bf16.msra.mxu0 %v1276_v51  ;;  %v765_v51 = vld [vmem:[%s1765_s8 + $0x58] sm:$0xff] }
  0x38   :  { %1119 = vmatprep.subr.bf16.mxu0 %v1277_v52  ;;  %v797_v52 = vld [vmem:[%s1765_s8 + $0x158] sm:$0xff] }
  0x3b   :  { %1120 = vmatpush3.bf16.msra.mxu0 %v1278_v53  ;;  %v780_v53 = vld [vmem:[%s1765_s8 + $0xd0] sm:$0xff] }
  0x3c   :  { %1121 = vmatprep.subr.bf16.mxu0 %v1279_v54  ;;  %v812_v54 = vld [vmem:[%s1765_s8 + $0x1d0] sm:$0xff] }
  0x3f   :  { %1122 = vmatpush3.bf16.msra.mxu0 %v1280_v55  ;;  %v764_v55 = vld [vmem:[%s1765_s8 + $0x50] sm:$0xff] }
  0x40   :  { %1173 = vmatprep.subr.mxu0 %v817_v27  ;;  %v755_v27 = vld [vmem:[%s1765_s8 + $0x8] sm:$0xff] }
  0x42   :  { %572 = vmatmul.mubr.bf16.vlgmr.msra.gmra.mxu0 %v1007_v56  ;;  %v796_v56 = vld [vmem:[%s1765_s8 + $0x150] sm:$0xff] }
  0x43   :  { %1174 = vmatpush3.msra.mxu0 %v801_v29  ;;  %v770_v29 = vld [vmem:[%s1765_s8 + $0x80] sm:$0xff] }
  0x44   :  { %1175 = vmatprep.subr.mxu0 %v816_v31  ;;  %v754_v31 = vld [vmem:[%s1765_s8] sm:$0xff] }
  0x45   :  { %1176 = vmatpush3.msra.mxu0 %v800_v33 }
  0x46   :  { %1177 = vmatprep.subr.mxu0 %v815_v42 }
  0x47   :  { %1178 = vmatpush3.msra.mxu0 %v799_v44  ;;  %v716_v44 = vld [vmem:[%s1768_s7] sm:$0xf] }
  0x48   :  { %1179 = vmatprep.subr.mxu0 %v814_v46 }
  0x49   :  { %1180 = vmatpush3.msra.mxu0 %v798_v48 }
  0x4a   :  { %1181 = vmatprep.subr.mxu0 %v813_v50 }
  0x4b   :  { %1182 = vmatpush3.msra.mxu0 %v797_v52 }
  0x4c   :  { %1183 = vmatprep.subr.mxu0 %v812_v54 }
  0x4d   :  { %1184 = vmatpush3.msra.mxu0 %v796_v56 }
  0x4e   :  { %1185 = vmatprep.subr.mxu0 %v811_v58 }
  0x4f   :  { %1186 = vmatpush3.msra.mxu0 %v795_v60 }
  0x50   :  { %1187 = vmatprep.subr.mxu0 %v810_v62 }
  0x51   :  { %1188 = vmatpush3.msra.mxu0 %v794_v0 }
  0xe2   :  { %v1079_v2 = vpop.f32.mrf.mxu0 }
  0xe4   :  { %v1080_v3 = vpop.f32.mrf.mxu0  ;;  %v1101_v4 = vpop.f32.mrf.mxu1 }
  0xe5   :  { %v1081_v10 = vadd.f32 %v1080_v3, %v1079_v2  ;;  %v809_v2 = vld [vmem:[%s1765_s8 + $0x1b8] sm:$0xff] }
  0xe6   :  { %v1082_v5 = vpop.f32.mrf.mxu0  ;;  %v1102_v6 = vpop.f32.mrf.mxu1  ;;  %1189 = vmatprep.subr.mxu0 %v809_v2  ;;  %v761_v3 = vld [vmem:[%s1765_s8 + $0x38] sm:$0xff] }
  0xe7   :  { %v494_v12 = vadd.f32 %v1081_v10, %v1002_v11  ;;  %v1103_v13 = vadd.f32 %v1102_v6, %v1101_v4  ;;  %v793_v4 = vld [vmem:[%s1765_s8 + $0x138] sm:$0xff]  ;;  %v776_v5 = vld [vmem:[%s1765_s8 + $0xb0] sm:$0xff]  ;;  %v807_v10 = vld [vmem:[%s1765_s8 + $0x1a8] sm:$0xff] }
  0xe8   :  { %v1083_v7 = vpop.f32.mrf.mxu0  ;;  %v1104_v8 = vpop.f32.mrf.mxu1  ;;  %1190 = vmatpush3.msra.mxu0 %v793_v4  ;;  %v808_v6 = vld [vmem:[%s1765_s8 + $0x1b0] sm:$0xff]  ;;  %v759_v11 = vld [vmem:[%s1765_s8 + $0x28] sm:$0xff] }
  0xe9   :  { %v534_v16 = vadd.f32 %v1103_v13, %v494_v12  ;;  %1191 = vmatprep.subr.mxu0 %v808_v6  ;;  %v760_v7 = vld [vmem:[%s1765_s8 + $0x30] sm:$0xff]  ;;  %v791_v12 = vld [vmem:[%s1765_s8 + $0x128] sm:$0xff]  ;;  %v774_v13 = vld [vmem:[%s1765_s8 + $0xa0] sm:$0xff]  ;;  %v17_v6 = vstv %s1769_s11 }
  0xea   :  { %v1105_v9 = vpop.f32.mrf.mxu1  ;;  %v792_v8 = vld [vmem:[%s1765_s8 + $0x130] sm:$0xff]  ;;  %18 = vst [vmem:[#allocation2] sm:$0x1] %v17_v6 }
  0xeb   :  { %1192 = vmatpush3.msra.mxu0 %v792_v8  ;;  %v775_v9 = vld [vmem:[%s1765_s8 + $0xa8] sm:$0xff] }
  0xec   :  { %1193 = vmatprep.subr.mxu0 %v807_v10 }
  0xed   :  { %1194 = vmatpush3.msra.mxu0 %v791_v12 }
 0x102   :  { %v1123_v14 = vpop.f32.mrf.mxu0 }
 0x104   :  { %v1124_v15 = vpop.f32.mrf.mxu0 }
 0x105   :  { %v1125_v17 = vadd.f32 %v1124_v15, %v1123_v14  ;;  %v806_v14 = vld [vmem:[%s1765_s8 + $0x1a0] sm:$0xff] }
 0x106   :  { %v1126_v18 = vpop.f32.mrf.mxu0  ;;  %1195 = vmatprep.subr.mxu0 %v806_v14  ;;  %v758_v15 = vld [vmem:[%s1765_s8 + $0x20] sm:$0xff] }
 0x107   :  { %v574_v19 = vadd.f32 %v1125_v17, %v534_v16  ;;  %v790_v16 = vld [vmem:[%s1765_s8 + $0x120] sm:$0xff]  ;;  %v773_v17 = vld [vmem:[%s1765_s8 + $0x98] sm:$0xff] }
 0x108   :  { %v1127_v20 = vpop.f32.mrf.mxu0  ;;  %1196 = vmatpush3.msra.mxu0 %v790_v16  ;;  %v805_v18 = vld [vmem:[%s1765_s8 + $0x198] sm:$0xff] }
 0x109   :  { %1225 = vmatmul.mubr.msk.f32.vlgmr.msra.gmra.mxu1 %vm594_vm1, %v574_v19  ;;  %v757_v19 = vld [vmem:[%s1765_s8 + $0x18] sm:$0xff]  ;;  %1197 = vmatprep.subr.mxu0 %v805_v18 }
 0x10a   :  { %1139 = vmatpush3.msra.mxu1 %v769_v28  ;;  %v789_v20 = vld [vmem:[%s1765_s8 + $0x118] sm:$0xff]  ;;  %v787_v28 = vld [vmem:[%s1765_s8 + $0x108] sm:$0xff] }
 0x10b   :  { %1140 = vmatprep.subr.mxu1 %v784_v30  ;;  %1198 = vmatpush3.msra.mxu0 %v789_v20  ;;  %v802_v30 = vld [vmem:[%s1765_s8 + $0x180] sm:$0xff] }
 0x10c   :  { %1141 = vmatpush3.msra.mxu1 %v768_v32  ;;  %v786_v32 = vld [vmem:[%s1765_s8 + $0x100] sm:$0xff] }
 0x10d   :  { %1142 = vmatprep.subr.mxu1 %v783_v41  ;;  %v1062_v20 = vld [vmem:[#allocation2] ss:$0 sm:$0xff] }
 0x10e   :  { %1143 = vmatpush3.msra.mxu1 %v767_v43 }
 0x10f   :  { %1144 = vmatprep.subr.mxu1 %v782_v45 }
 0x110   :  { %1145 = vmatpush3.msra.mxu1 %v766_v47 }
 0x111   :  { %1146 = vmatprep.subr.mxu1 %v781_v49 }
 0x112   :  { %1147 = vmatpush3.msra.mxu1 %v765_v51 }
 0x113   :  { %1148 = vmatprep.subr.mxu1 %v780_v53 }
 0x114   :  { %1149 = vmatpush3.msra.mxu1 %v764_v55 }
 0x115   :  { %1150 = vmatprep.subr.mxu1 %v779_v57 }
 0x116   :  { %1151 = vmatpush3.msra.mxu1 %v763_v59 }
 0x117   :  { %1152 = vmatprep.subr.mxu1 %v778_v61 }
 0x118   :  { %1153 = vmatpush3.msra.mxu1 %v762_v63 }
 0x119   :  { %1154 = vmatprep.subr.mxu1 %v777_v1 }
 0x11a   :  { %1155 = vmatpush3.msra.mxu1 %v761_v3 }
 0x11b   :  { %1156 = vmatprep.subr.mxu1 %v776_v5 }
 0x11c   :  { %1157 = vmatpush3.msra.mxu1 %v760_v7 }
 0x11d   :  { %1158 = vmatprep.subr.mxu1 %v775_v9  ;;  %v1060_v9 = vld [vmem:[%s1770_s9] ss:$0 sm:$0xff] }
 0x11e   :  { %1159 = vmatpush3.msra.mxu1 %v759_v11 }
 0x11f   :  { %1160 = vmatprep.subr.mxu1 %v774_v13 }
 0x120   :  { %1161 = vmatpush3.msra.mxu1 %v758_v15 }
 0x121   :  { %1162 = vmatprep.subr.mxu1 %v773_v17  ;;  %v1061_v17 = vld [vmem:[%s1771_s10] ss:$0 sm:$0xff] }
 0x122   :  { %1163 = vmatpush3.msra.mxu1 %v757_v19 }
 0x1c9   :  { %v664_v22 = vpop.f32.mrf.mxu1 }
 0x1ca   :  { %v665_v23 = vadd.f32 %v1057_v21, %v664_v22  ;;  %v772_v21 = vld [vmem:[%s1765_s8 + $0x90] sm:$0xff] }
 0x1cb   :  { %v1226_v24 = vpop.f32.mrf.mxu1  ;;  %v804_v22 = vld [vmem:[%s1765_s8 + $0x190] sm:$0xff]  ;;  %1164 = vmatprep.subr.mxu1 %v772_v21 }
 0x1cc   :  { %v669_v25 = vsel %vm668_vm2, %v665_v23, -inf  ;;  %v788_v24 = vld [vmem:[%s1765_s8 + $0x110] sm:$0xff]  ;;  %1199 = vmatprep.subr.mxu0 %v804_v22 }
 0x1cd   :  { %670 = vmax.xlane.f32.xlu0 %v669_v25  ;;  %v771_v25 = vld [vmem:[%s1765_s8 + $0x88] sm:$0xff]  ;;  %1200 = vmatpush3.msra.mxu0 %v788_v24 }
 0x1ce   :  { %1201 = vmatprep.subr.mxu0 %v803_v26 }
 0x1cf   :  { %1202 = vmatpush3.msra.mxu0 %v787_v28 }
 0x1d0   :  { %1203 = vmatprep.subr.mxu0 %v802_v30 }
 0x1d1   :  { %1204 = vmatpush3.msra.mxu0 %v786_v32 }
 0x256   :  { %v1566_v34 = vpop.xlane.xlu0 %670 }
 0x257   :  { %v673_v35 = vsub.f32 %v665_v23, %v1566_v34  ;;  %v756_v23 = vld [vmem:[%s1765_s8 + $0x10] sm:$0xff] }
 0x258   :  { %1165 = vmatpush3.msra.mxu1 %v756_v23 }
 0x259   :  { %v674_v36 = vmul.f32 1.442695, %v673_v35  ;;  %1166 = vmatprep.subr.mxu1 %v771_v25  ;;  %v692_v35 = vlaneseq }
 0x25a   :  { %1167 = vmatpush3.msra.mxu1 %v755_v27 }
 0x25b   :  { %1283 = vpow2.f32 %v674_v36  ;;  %1168 = vmatprep.subr.mxu1 %v770_v29  ;;  %v693_v36 = vshrl.u32 %v692_v35, 7 }
 0x25c   :  { %1169 = vmatpush3.msra.mxu1 %v754_v31 }
 0x25d   :  { %v702_v41 = vsub.s32 2, %v693_v36 }
 0x25f   :  { %v729_v54 = vrot.slane %v716_v44, %v702_v41 }
 0x268   :  { %v1284_v38 = vpop.eup %1283 }
 0x269   :  { %v682_v39 = vmul.f32 %v1284_v38, %v1059_v37  ;;  %v698_v37 = vsub.s32 1, %v693_v36  ;;  %v690_v38 = vld [vmem:[%s1767_s6] sm:$0xf] }
 0x26a   :  { %v703_v49 = vrot.slane %v690_v38, %v702_v41 }
 0x26b   :  { %v683_v40 = vsel %vm668_vm2, %v682_v39, 0.0  ;;  %v706_v39 = vsub.s32 3, %v693_v36  ;;  %v699_v45 = vrot.slane %v690_v38, %v698_v37  ;;  %v725_v50 = vrot.slane %v716_v44, %v698_v37 }
 0x26c   :  { %684 = vadd.xlane.f32.xlu0 %v683_v40  ;;  %v694_v40 = vsub.s32 0, %v693_v36 }
 0x26d   :  { %v707_v47 = vrot.slane %v690_v38, %v706_v39  ;;  %v733_v52 = vrot.slane %v716_v44, %v706_v39 }
 0x26e   :  { %v695_v48 = vrot.slane %v690_v38, %v694_v40  ;;  %v721_v53 = vrot.slane %v716_v44, %v694_v40 }
 0x2f5   :  { %v685_v33 = vpop.xlane.xlu0 %684 }
 0x2f6   :  { %1285 = vlog2.f32 %v685_v33 }
 0x303   :  { %v1286_v42 = vpop.eup %1285 }
 0x304   :  { %v687_v43 = vmul.f32 0.6931472, %v1286_v42 }
 0x306   :  { %v688_v46 = vadd.f32 %v687_v43, %v1566_v34 }
 0x308   :  { %v689_v51 = vsub.f32 0.0, %v688_v46 }
 0x30a   :  { %v713_v55 = vmul.f32 %v699_v45, %v689_v51  ;;  %v715_v56 = vmul.f32 %v707_v47, %v689_v51  ;;  %v712_v57 = vmul.f32 %v695_v48, %v689_v51  ;;  %v714_v58 = vmul.f32 %v703_v49, %v689_v51 }
 0x30c   :  { %v739_v59 = vadd.f32 %v725_v50, %v713_v55  ;;  %v741_v60 = vadd.f32 %v733_v52, %v715_v56  ;;  %v738_v61 = vadd.f32 %v721_v53, %v712_v57  ;;  %v740_v62 = vadd.f32 %v729_v54, %v714_v58 }
 0x30e   :  { %vm743_vm3 = vcmp.ge.f32.partialorder %v739_v59, 0.0  ;;  %v747_v63 = vmul.f32 0.01, %v739_v59  ;;  %vm745_vm4 = vcmp.ge.f32.partialorder %v741_v60, 0.0  ;;  %v749_v34 = vmul.f32 0.01, %v741_v60 }
 0x30f   :  { %vm742_vm5 = vcmp.ge.f32.partialorder %v738_v61, 0.0  ;;  %v746_v0 = vmul.f32 0.01, %v738_v61  ;;  %vm744_vm6 = vcmp.ge.f32.partialorder %v740_v62, 0.0  ;;  %v748_v1 = vmul.f32 0.01, %v740_v62 }
 0x310   :  { %v751_v2 = vsel %vm743_vm3, %v739_v59, %v747_v63  ;;  %v753_v3 = vsel %vm745_vm4, %v741_v60, %v749_v34 }
 0x311   :  { %889 = vmatprep.mubr.f32.mxu1 %v751_v2  ;;  %959 = vmatprep.mubr.f32.mxu0 %v753_v3  ;;  %v750_v4 = vsel %vm742_vm5, %v738_v61, %v746_v0  ;;  %v752_v5 = vsel %vm744_vm6, %v740_v62, %v748_v1 }
 0x312   :  { %890 = vmatmul.mubr.f32.vlgmr.msra.gmra.mxu1 %v750_v4  ;;  %960 = vmatmul.mubr.f32.vlgmr.msra.gmra.mxu0 %v752_v5 }
 0x3d2   :  { %v1170_v7 = vpop.f32.mrf.mxu1  ;;  %v1205_v8 = vpop.f32.mrf.mxu0 }
 0x3d4   :  { %v1171_v10 = vpop.f32.mrf.mxu1  ;;  %v1206_v11 = vpop.f32.mrf.mxu0 }
 0x3d5   :  { %v1172_v12 = vadd.f32 %v1171_v10, %v1170_v7  ;;  %v1207_v14 = vadd.f32 %v1206_v11, %v1205_v8 }
 0x3d7   :  { %v892_v13 = vadd.f32 %v1172_v12, %v1060_v9 }
 0x3d9   :  { %v962_v15 = vadd.f32 %v1207_v14, %v892_v13 }
 0x3db   :  { %vm965_vm7 = vcmp.ge.f32.partialorder %v962_v15, 0.0  ;;  %v966_v16 = vmul.f32 0.01, %v962_v15 }
 0x3dd   :  { %v967_v18 = vsel %vm965_vm7, %v962_v15, %v966_v16 }
 0x3de   :  { %v975_v19 = vmul.f32 %v1061_v17, %v967_v18 }
 0x3e0   :  { %976 = vadd.xlane.f32.xlu1 %v975_v19 }
 0x469   :  { %v977_v21 = vpop.xlane.xlu1 %976 }
 0x46a   :  { %v985_v22 = vadd.f32 %v1062_v20, %v977_v21 }
 0x46c   :  { %v986_v23 = vand.u32 2147483647, %v985_v22  ;;  %vm993_vm9 = vcmp.ge.f32.partialorder %v985_v22, 0.0 }
 0x46e   :  { %v987_v24 = vsub.f32 0.0, %v986_v23 }
 0x470   :  { %v988_v25 = vmul.f32 1.442695, %v987_v24 }
 0x472   :  { %1287 = vpow2.f32 %v988_v25 }
 0x47f   :  { %v1288_v26 = vpop.eup %1287 }
 0x480   :  { %v990_v27 = vadd.f32 1.0, %v1288_v26 }
 0x482   :  { %1289 = vrcp.f32 %v990_v27 }
 0x48f   :  { %v1290_v28 = vpop.eup %1289 }
 0x490   :  { %v994_v29 = vsub.f32 1.0, %v1290_v28 }
 0x492   :  { %v995_v30 = vsel %vm993_vm9, %v1290_v28, %v994_v29 }
 0x493   :  { %997 = vst.msk [vmem:[%s1772_s12] sm:$0xff] %vm996_vm8, %v995_v30 }

</bundles_post_ra>
